<compile_context>
chip_gen: v7x
topology: tpu7x:2x2x1
jax: 0.10.0
libtpu: 0.0.40
codegen_flags: <defaults>
</compile_context>

<pallas_src>
import numpy as np
import jax
import jax.numpy as jnp
from jax.experimental import pallas as pl
from jax.experimental.pallas import tpu as pltpu

BN_EPS = 1e-3
VMEM_LIMIT = 32 * 1024 * 1024          # safe scoped-VMEM request on v5e/v6e/v7x


def _round_up(v, m):
    return ((v + m - 1) // m) * m


# ----------------------------------------------------------------------------
# Pallas kernels
# ----------------------------------------------------------------------------
def _gemm_stats_kernel(x_ref, w_ref, z_ref, sum_ref, sq_ref):
    """z = x @ w (bf16 inputs, f32 MXU accum) + per-channel sum / sum-of-squares.

    Padding rows gather the sentinel zero row, so they contribute exactly zero
    to the statistics -> no mask is needed in this pass."""
    z = jnp.dot(x_ref[...], w_ref[...], preferred_element_type=jnp.float32)
    z_ref[...] = z

    @pl.when(pl.program_id(0) == 0)
    def _():
        sum_ref[...] = jnp.zeros_like(sum_ref)
        sq_ref[...] = jnp.zeros_like(sq_ref)

    sum_ref[...] += jnp.sum(z, axis=0, keepdims=True)
    sq_ref[...] += jnp.sum(z * z, axis=0, keepdims=True)


def _bn_relu_kernel(n_ref, z_ref, scale_ref, shift_ref, o_ref):
    tm, cout = z_ref.shape
    row = jax.lax.broadcasted_iota(jnp.int32, (tm, cout), 0) + pl.program_id(0) * tm
    y = z_ref[...] * scale_ref[...] + shift_ref[...]
    o_ref[...] = jnp.where(row < n_ref[0], jnp.maximum(y, 0.0), 0.0)


def _bn_relu_res_kernel(n_ref, z_ref, scale_ref, shift_ref, res_ref, o_ref):
    tm, cout = z_ref.shape
    row = jax.lax.broadcasted_iota(jnp.int32, (tm, cout), 0) + pl.program_id(0) * tm
    y = z_ref[...] * scale_ref[...] + shift_ref[...] + res_ref[...]
    o_ref[...] = jnp.where(row < n_ref[0], jnp.maximum(y, 0.0), 0.0)


# ----------------------------------------------------------------------------
# Tiling / rulebook "plans"
# ----------------------------------------------------------------------------
def _choose_tiles(n_valid, k_dim):
    """Row tile sized for VMEM: a bf16 x tile stays <= ~1.8 MiB so double
    buffering + resident weights fit comfortably under v7x's 64 MiB physical
    (32 MiB scoped) VMEM; v5e/v6e have even more headroom."""
    n_min = _round_up(n_valid + 1, 16)          # +1 keeps a zero sentinel row
    tm_cap = 256 if k_dim >= 2048 else 512
    if n_min <= tm_cap:
        return n_min, n_min
    return _round_up(n_min, tm_cap), tm_cap


def make_plan(gather_idx_np, sentinel, cin):
    """Package a rulebook for reuse: sentinel/row-padded device index matrix plus
    tile geometry.  Extra sentinel 'taps' make the flattened contraction dim a
    multiple of 128 without an extra pad copy of the big gathered tensor."""
    n_out, K = gather_idx_np.shape
    k_dim = _round_up(K * cin, 128)
    k_eff = k_dim // cin if (k_dim % cin == 0) else K   # fallback pads x instead
    n_pad, tm = _choose_tiles(n_out, k_dim)
    idx = np.full((n_pad, k_eff), sentinel, np.int32)
    idx[:n_out, :K] = gather_idx_np
    return dict(idx=jnp.asarray(idx), n_valid=n_out, n_pad=n_pad, tm=tm,
                k_dim=k_dim, cin=cin)


# ----------------------------------------------------------------------------
# One sparse conv + BN(training batch stats) + ReLU (+ residual), two-pass tiled
# ----------------------------------------------------------------------------
def run_conv(feats, plan, p, residual=None):
    cin = plan['cin']
    cout = p['w'].shape[1]
    n_pad, tm, k_dim, n_valid = plan['n_pad'], plan['tm'], plan['k_dim'], plan['n_valid']
    grid = (n_pad // tm,)

    # Gather neighborhoods in bf16 (halves the expanded-tensor HBM traffic).
    # TODO(synk): fuse this row gather into the GEMM kernel (per-row DMA gather
    # with a scalar-prefetched rulebook) to remove the K-fold HBM expansion.
    idx = plan['idx']
    x = feats.astype(jnp.bfloat16)[idx].reshape(n_pad, idx.shape[1] * cin)
    if x.shape[1] != k_dim:
        x = jnp.pad(x, ((0, 0), (0, k_dim - x.shape[1])))
    w = p['w'].astype(jnp.bfloat16)
    if w.shape[0] != k_dim:
        w = jnp.pad(w, ((0, k_dim - w.shape[0]), (0, 0)))

    # ---- pass 1: tiled bf16 GEMM + per-channel statistics ----
    cost = pl.CostEstimate(
        flops=2 * n_pad * k_dim * cout, transcendentals=0,
        bytes_accessed=n_pad * k_dim * 2 + k_dim * cout * 2 + n_pad * cout * 4)
    z, s, sq = pl.pallas_call(
        _gemm_stats_kernel,
        grid=grid,
        in_specs=[pl.BlockSpec((tm, k_dim), lambda i: (i, 0)),
                  pl.BlockSpec((k_dim, cout), lambda i: (0, 0))],   # weights VMEM-resident
        out_specs=[pl.BlockSpec((tm, cout), lambda i: (i, 0)),
                   pl.BlockSpec((1, cout), lambda i: (0, 0)),
                   pl.BlockSpec((1, cout), lambda i: (0, 0))],
        out_shape=[jax.ShapeDtypeStruct((n_pad, cout), jnp.float32),
                   jax.ShapeDtypeStruct((1, cout), jnp.float32),
                   jax.ShapeDtypeStruct((1, cout), jnp.float32)],
        compiler_params=pltpu.CompilerParams(
            dimension_semantics=("arbitrary",), vmem_limit_bytes=VMEM_LIMIT),
        cost_estimate=cost,
    )(x, w)

    # ---- fold BN (training-mode batch stats over valid voxels) into scale/shift.
    # The conv bias (p['b']) is intentionally NOT added: a per-channel constant
    # before training-mode BN cancels exactly in (z - mean).
    n = jnp.float32(max(n_valid, 1))             # guards n_valid == 0 (no NaNs)
    mean = s / n
    var = jnp.maximum(sq / n - mean * mean, 0.0)
    inv = jax.lax.rsqrt(var + BN_EPS)
    scale = p['gamma'].reshape(1, cout) * inv
    shift = p['beta'].reshape(1, cout) - mean * scale

    # ---- pass 2: normalize (+ residual) + ReLU, zero the padding rows ----
    n_arr = jnp.array([n_valid], jnp.int32)
    common = dict(
        grid=grid,
        out_specs=pl.BlockSpec((tm, cout), lambda i: (i, 0)),
        out_shape=jax.ShapeDtypeStruct((n_pad, cout), jnp.float32),
        compiler_params=pltpu.CompilerParams(
            dimension_semantics=("parallel",), vmem_limit_bytes=VMEM_LIMIT))
    if residual is None:
        out = pl.pallas_call(
            _bn_relu_kernel,
            in_specs=[pl.BlockSpec(memory_space=pltpu.MemorySpace.SMEM),
                      pl.BlockSpec((tm, cout), lambda i: (i, 0)),
                      pl.BlockSpec((1, cout), lambda i: (0, 0)),
                      pl.BlockSpec((1, cout), lambda i: (0, 0))],
            **common,
        )(n_arr, z, scale, shift)
    else:
        res = residual
        if res.shape[0] < n_pad:
            res = jnp.pad(res, ((0, n_pad - res.shape[0]), (0, 0)))
        elif res.shape[0] > n_pad:
            res = res[:n_pad]
        out = pl.pallas_call(
            _bn_relu_res_kernel,
            in_specs=[pl.BlockSpec(memory_space=pltpu.MemorySpace.SMEM),
                      pl.BlockSpec((tm, cout), lambda i: (i, 0)),
                      pl.BlockSpec((1, cout), lambda i: (0, 0)),
                      pl.BlockSpec((1, cout), lambda i: (0, 0)),
                      pl.BlockSpec((tm, cout), lambda i: (i, 0))],
            **common,
        )(n_arr, z, scale, shift, res)
    return out   # (n_pad, cout); rows >= n_valid are exactly zero


def basic_block(feats, plan, p1, p2):
    # SparseBasicBlock: conv1->bn1->relu, conv2->bn2, +identity, relu
    identity = feats
    out = run_conv(feats, plan, p1)
    out = run_conv(out, plan, p2, residual=identity)
    return out


# ----------------------------------------------------------------------------
# Host-side (NumPy) sparse rulebook construction.
# TODO(synk): spconv builds these rulebooks on-device with hash tables; the
# data-dependent coordinate hashing/gather-index generation is done in NumPy.
# ----------------------------------------------------------------------------
def _index_grid(coords, spatial_shape, batch_size):
    D, H, W = spatial_shape
    grid = -np.ones((batch_size, D, H, W), np.int64)
    grid[coords[:, 0], coords[:, 1], coords[:, 2], coords[:, 3]] = np.arange(coords.shape[0])
    return grid


def subm_gather_idx(coords, spatial_shape, batch_size, ksize=(3, 3, 3)):
    grid = _index_grid(coords, spatial_shape, batch_size)
    N = coords.shape[0]
    D, H, W = spatial_shape
    kD, kH, kW = ksize
    pD, pH, pW = kD // 2, kH // 2, kW // 2
    cols = []
    for dz in range(kD):
        for dy in range(kH):
            for dx in range(kW):
                z = coords[:, 1] + dz - pD
                y = coords[:, 2] + dy - pH
                x = coords[:, 3] + dx - pW
                valid = (z >= 0) & (z < D) & (y >= 0) & (y < H) & (x >= 0) & (x < W)
                g = np.where(valid,
                             grid[coords[:, 0], np.clip(z, 0, D - 1),
                                  np.clip(y, 0, H - 1), np.clip(x, 0, W - 1)], -1)
                cols.append(np.where(g >= 0, g, N))
    return np.stack(cols, axis=1).astype(np.int32)


def spconv_structure(coords, spatial_shape, batch_size, ksize, stride, padding):
    D, H, W = spatial_shape
    kD, kH, kW = ksize
    sD, sH, sW = stride
    pD, pH, pW = padding
    oD = (D + 2 * pD - kD) // sD + 1
    oH = (H + 2 * pH - kH) // sH + 1
    oW = (W + 2 * pW - kW) // sW + 1
    grid_in = _index_grid(coords, spatial_shape, batch_size)

    occ = np.zeros((batch_size, oD, oH, oW), bool)
    b, z, y, x = coords[:, 0], coords[:, 1], coords[:, 2], coords[:, 3]
    for kz in range(kD):
        for ky in range(kH):
            for kx in range(kW):
                nz, ny, nx = z + pD - kz, y + pH - ky, x + pW - kx
                ok = (nz % sD == 0) & (ny % sH == 0) & (nx % sW == 0)
                oz, oy, ox = nz // sD, ny // sH, nx // sW
                ok &= (oz >= 0) & (oz < oD) & (oy >= 0) & (oy < oH) & (ox >= 0) & (ox < oW)
                occ[b[ok], oz[ok], oy[ok], ox[ok]] = True

    out_coords = np.argwhere(occ).astype(np.int32)   # (M, 4): b, oz, oy, ox
    N = coords.shape[0]
    cols = []
    for kz in range(kD):
        for ky in range(kH):
            for kx in range(kW):
                iz = out_coords[:, 1] * sD - pD + kz
                iy = out_coords[:, 2] * sH - pH + ky
                ix = out_coords[:, 3] * sW - pW + kx
                valid = (iz >= 0) & (iz < D) & (iy >= 0) & (iy < H) & (ix >= 0) & (ix < W)
                g = np.where(valid,
                             grid_in[out_coords[:, 0], np.clip(iz, 0, D - 1),
                                     np.clip(iy, 0, H - 1), np.clip(ix, 0, W - 1)], -1)
                cols.append(np.where(g >= 0, g, N))
    gather_idx = np.stack(cols, axis=1).astype(np.int32)
    return out_coords, (oD, oH, oW), gather_idx


# ----------------------------------------------------------------------------
# Deterministic parameter construction (matches __init__ shapes; synthetic init)
# ----------------------------------------------------------------------------
def _init_conv(key, kvol, cin, cout, bias):
    kw, kb = jax.random.split(key)
    fan_in = kvol * cin
    w = jax.random.normal(kw, (fan_in, cout), jnp.float32) / np.sqrt(fan_in)
    # 'b' is kept for shape fidelity; it is not used at runtime because a
    # per-channel constant before training-mode BN cancels exactly.
    b = (0.01 * jax.random.normal(kb, (cout,), jnp.float32)) if bias \
        else jnp.zeros((cout,), jnp.float32)
    return {'w': w, 'b': b,
            'gamma': jnp.ones((cout,), jnp.float32),
            'beta': jnp.zeros((cout,), jnp.float32)}


def init_params(key, input_channels):
    keys = iter(jax.random.split(key, 32))
    p = {}
    p['conv_input'] = _init_conv(next(keys), 27, input_channels, 16, False)
    p['res1'] = [(_init_conv(next(keys), 27, 16, 16, True),
                  _init_conv(next(keys), 27, 16, 16, True)) for _ in range(2)]
    p['down2'] = _init_conv(next(keys), 27, 16, 32, False)
    p['res2'] = [(_init_conv(next(keys), 27, 32, 32, True),
                  _init_conv(next(keys), 27, 32, 32, True)) for _ in range(2)]
    p['down3'] = _init_conv(next(keys), 27, 32, 64, False)
    p['res3'] = [(_init_conv(next(keys), 27, 64, 64, True),
                  _init_conv(next(keys), 27, 64, 64, True)) for _ in range(2)]
    p['down4'] = _init_conv(next(keys), 27, 64, 128, False)
    p['res4'] = [(_init_conv(next(keys), 27, 128, 128, True),
                  _init_conv(next(keys), 27, 128, 128, True)) for _ in range(2)]
    p['conv_out'] = _init_conv(next(keys), 3, 128, 128, False)   # kernel (3,1,1)
    return p


# ----------------------------------------------------------------------------
# Forward pass (mirrors VoxelResBackBone8x.forward)
# ----------------------------------------------------------------------------
def voxel_res_backbone_8x(params, voxel_features, voxel_coords, batch_size, grid_size):
    sparse_shape = tuple((np.array(grid_size[::-1]) + np.array([1, 0, 0])).tolist())
    coords0 = np.asarray(voxel_coords, np.int32)
    n0 = coords0.shape[0]
    cin0 = np.asarray(voxel_features).shape[1]

    # ---- host-side rulebooks for ALL levels up-front (depend only on coords,
    #      so the host hashing does not interleave with device launches) ----
    idx0 = subm_gather_idx(coords0, sparse_shape, batch_size)
    coords2, shape2, didx2 = spconv_structure(coords0, sparse_shape, batch_size,
                                              (3, 3, 3), (2, 2, 2), (1, 1, 1))
    idx2 = subm_gather_idx(coords2, shape2, batch_size)
    coords3, shape3, didx3 = spconv_structure(coords2, shape2, batch_size,
                                              (3, 3, 3), (2, 2, 2), (1, 1, 1))
    idx3 = subm_gather_idx(coords3, shape3, batch_size)
    coords4, shape4, didx4 = spconv_structure(coords3, shape3, batch_size,
                                              (3, 3, 3), (2, 2, 2), (0, 1, 1))
    idx4 = subm_gather_idx(coords4, shape4, batch_size)
    coords_out, shape_out, didx_out = spconv_structure(coords4, shape4, batch_size,
                                                       (3, 1, 1), (2, 1, 1), (0, 0, 0))
    n2, n3, n4 = coords2.shape[0], coords3.shape[0], coords4.shape[0]

    # one plan per (rulebook, input-channel count); reused by every conv sharing it
    p_in = make_plan(idx0, n0, cin0)
    p_l1 = make_plan(idx0, n0, 16)
    p_d2 = make_plan(didx2, n0, 16)
    p_l2 = make_plan(idx2, n2, 32)
    p_d3 = make_plan(didx3, n2, 32)
    p_l3 = make_plan(idx3, n3, 64)
    p_d4 = make_plan(didx4, n3, 64)
    p_l4 = make_plan(idx4, n4, 128)
    p_out = make_plan(didx_out, n4, 128)

    # features keep the padded row layout between layers (rows >= n_valid are
    # zero and double as the gather sentinel) -> no pad/slice HBM round trips.
    feats = jnp.asarray(voxel_features, jnp.float32)
    feats = jnp.pad(feats, ((0, _round_up(n0 + 1, 16) - n0), (0, 0)))

    x = run_conv(feats, p_in, params['conv_input'])
    for (c1, c2) in params['res1']:
        x = basic_block(x, p_l1, c1, c2)
    x_conv1 = x

    x = run_conv(x_conv1, p_d2, params['down2'])
    for (c1, c2) in params['res2']:
        x = basic_block(x, p_l2, c1, c2)
    x_conv2 = x

    x = run_conv(x_conv2, p_d3, params['down3'])
    for (c1, c2) in params['res3']:
        x = basic_block(x, p_l3, c1, c2)
    x_conv3 = x

    x = run_conv(x_conv3, p_d4, params['down4'])
    for (c1, c2) in params['res4']:
        x = basic_block(x, p_l4, c1, c2)
    x_conv4 = x

    out = run_conv(x_conv4, p_out, params['conv_out'])
    n_out = coords_out.shape[0]

    return {
        'encoded_spconv_tensor': {'features': out[:n_out], 'indices': coords_out,
                                  'spatial_shape': shape_out},
        'encoded_spconv_tensor_stride': 8,
        'multi_scale_3d_features': {
            'x_conv1': {'features': x_conv1[:n0], 'indices': coords0, 'spatial_shape': sparse_shape},
            'x_conv2': {'features': x_conv2[:n2], 'indices': coords2, 'spatial_shape': shape2},
            'x_conv3': {'features': x_conv3[:n3], 'indices': coords3, 'spatial_shape': shape3},
            'x_conv4': {'features': x_conv4[:n4], 'indices': coords4, 'spatial_shape': shape4},
        },
        'multi_scale_3d_strides': {'x_conv1': 1, 'x_conv2': 2, 'x_conv3': 4, 'x_conv4': 8},
    }


# ----------------------------------------------------------------------------
if __name__ == "__main__":
    key = jax.random.PRNGKey(0)
    batch_size = 2
    input_channels = 4
    grid_size = [16, 16, 24]        # (X, Y, Z) -> sparse_shape (Z+1, Y, X) = (25, 16, 16)
    num_voxels = 96

    k_params, kb, kz, ky, kx, kf = jax.random.split(key, 6)
    params = init_params(k_params, input_channels)

    # deterministic unique voxel coordinates (batch_idx, z, y, x)
    n_cand = 400
    cand = np.stack([
        np.asarray(jax.random.randint(kb, (n_cand,), 0, batch_size)),
        np.asarray(jax.random.randint(kz, (n_cand,), 0, grid_size[2])),
        np.asarray(jax.random.randint(ky, (n_cand,), 0, grid_size[1])),
        np.asarray(jax.random.randint(kx, (n_cand,), 0, grid_size[0])),
    ], axis=1).astype(np.int32)
    voxel_coords = np.unique(cand, axis=0)[:num_voxels]
    voxel_features = jax.random.normal(kf, (voxel_coords.shape[0], input_channels),
                                       jnp.float32)

    batch_dict = voxel_res_backbone_8x(params, voxel_features, voxel_coords,
                                       batch_size, grid_size)

    out_feats = batch_dict['encoded_spconv_tensor']['features']
    jax.block_until_ready(out_feats)
    for name in ('x_conv1', 'x_conv2', 'x_conv3', 'x_conv4'):
        jax.block_until_ready(batch_dict['multi_scale_3d_features'][name]['features'])

    assert out_feats.shape[1] == 128
    assert np.all(np.isfinite(np.asarray(out_feats)))
    print("KERNEL_OK")
</pallas_src>

<mosaic_0001>
module attributes {stable_mosaic.version = 11 : i64} {
  func.func @_gemm_stats_kernel(%arg0: i32, %arg1: memref<112x128xbf16, #tpu.memory_space<vmem>>, %arg2: memref<128x16xbf16, #tpu.memory_space<vmem>>, %arg3: memref<112x16xf32, #tpu.memory_space<vmem>>, %arg4: memref<1x16xf32, #tpu.memory_space<vmem>>, %arg5: memref<1x16xf32, #tpu.memory_space<vmem>>) attributes {dimension_semantics = [#tpu.dimension_semantics<arbitrary>], iteration_bounds = array<i64: 1>, scalar_prefetch = 0 : i64, scratch_operands = 0 : i64, tpu.core_type = #tpu.core_type<tc>, window_params = [{transform_indices = @transform_0, window_bounds = array<i64: 112, 128>}, {pipeline_mode = #tpu.pipeline_mode<synchronous>, transform_indices = @transform_1, window_bounds = array<i64: 128, 16>}, {transform_indices = @transform_2, window_bounds = array<i64: 112, 16>}, {pipeline_mode = #tpu.pipeline_mode<synchronous>, transform_indices = @transform_3, window_bounds = array<i64: 1, 16>}, {pipeline_mode = #tpu.pipeline_mode<synchronous>, transform_indices = @transform_4, window_bounds = array<i64: 1, 16>}]} {
    %c0 = arith.constant 0 : index
    %c0_0 = arith.constant 0 : index
    %0 = vector.load %arg1[%c0, %c0_0] : memref<112x128xbf16, #tpu.memory_space<vmem>>, vector<112x128xbf16>
    %c0_1 = arith.constant 0 : index
    %c0_2 = arith.constant 0 : index
    %1 = vector.load %arg2[%c0_1, %c0_2] : memref<128x16xbf16, #tpu.memory_space<vmem>>, vector<128x16xbf16>
    %cst = arith.constant dense<0.000000e+00> : vector<112x16xf32>
    %2 = tpu.matmul %0, %1, %cst {dimension_numbers = #tpu.dot_dimension_numbers<[1], [0], [0], [1], [0, 0, 1, 1], [], []>} : vector<112x128xbf16>, vector<128x16xbf16>, vector<112x16xf32> -> vector<112x16xf32>
    %c0_3 = arith.constant 0 : index
    %c0_4 = arith.constant 0 : index
    %3 = vector.load %arg3[%c0_3, %c0_4] : memref<112x16xf32, #tpu.memory_space<vmem>>, vector<112x16xf32>
    tpu.vector_store %arg3[%c0_3, %c0_4], %2 {strides = array<i32>} : memref<112x16xf32, #tpu.memory_space<vmem>>, vector<112x16xf32>,
    %c0_i32 = arith.constant 0 : i32
    %4 = arith.cmpi eq, %arg0, %c0_i32 : i32
    %5 = arith.extui %4 : i1 to i32
    %c0_i32_5 = arith.constant 0 : i32
    %6 = arith.cmpi ne, %5, %c0_i32_5 : i32
    scf.if %6 {
      %cst_16 = arith.constant 0.000000e+00 : f32
      %18 = vector.broadcast %cst_16 : f32 to vector<1x16xf32>
      %c0_17 = arith.constant 0 : index
      %c0_18 = arith.constant 0 : index
      %19 = vector.load %arg4[%c0_17, %c0_18] : memref<1x16xf32, #tpu.memory_space<vmem>>, vector<1x16xf32>
      tpu.vector_store %arg4[%c0_17, %c0_18], %18 {strides = array<i32>} : memref<1x16xf32, #tpu.memory_space<vmem>>, vector<1x16xf32>,
      %cst_19 = arith.constant 0.000000e+00 : f32
      %20 = vector.broadcast %cst_19 : f32 to vector<1x16xf32>
      %c0_20 = arith.constant 0 : index
      %c0_21 = arith.constant 0 : index
      %21 = vector.load %arg5[%c0_20, %c0_21] : memref<1x16xf32, #tpu.memory_space<vmem>>, vector<1x16xf32>
      tpu.vector_store %arg5[%c0_20, %c0_21], %20 {strides = array<i32>} : memref<1x16xf32, #tpu.memory_space<vmem>>, vector<1x16xf32>,
    } else {
    }
    %c0_6 = arith.constant 0 : index
    %c0_7 = arith.constant 0 : index
    %7 = vector.load %arg4[%c0_6, %c0_7] : memref<1x16xf32, #tpu.memory_space<vmem>>, vector<1x16xf32>
    %cst_8 = arith.constant dense<0.000000e+00> : vector<16xf32>
    %8 = vector.multi_reduction <add>, %2, %cst_8 [0] : vector<112x16xf32> to vector<16xf32>
    %9 = vector.shape_cast %8 : vector<16xf32> to vector<1x16xf32>
    %10 = arith.addf %7, %9 : vector<1x16xf32>
    %c0_9 = arith.constant 0 : index
    %c0_10 = arith.constant 0 : index
    %11 = vector.load %arg4[%c0_9, %c0_10] : memref<1x16xf32, #tpu.memory_space<vmem>>, vector<1x16xf32>
    tpu.vector_store %arg4[%c0_9, %c0_10], %10 {strides = array<i32>} : memref<1x16xf32, #tpu.memory_space<vmem>>, vector<1x16xf32>,
    %c0_11 = arith.constant 0 : index
    %c0_12 = arith.constant 0 : index
    %12 = vector.load %arg5[%c0_11, %c0_12] : memref<1x16xf32, #tpu.memory_space<vmem>>, vector<1x16xf32>
    %13 = arith.mulf %2, %2 : vector<112x16xf32>
    %cst_13 = arith.constant dense<0.000000e+00> : vector<16xf32>
    %14 = vector.multi_reduction <add>, %13, %cst_13 [0] : vector<112x16xf32> to vector<16xf32>
    %15 = vector.shape_cast %14 : vector<16xf32> to vector<1x16xf32>
    %16 = arith.addf %12, %15 : vector<1x16xf32>
    %c0_14 = arith.constant 0 : index
    %c0_15 = arith.constant 0 : index
    %17 = vector.load %arg5[%c0_14, %c0_15] : memref<1x16xf32, #tpu.memory_space<vmem>>, vector<1x16xf32>
    tpu.vector_store %arg5[%c0_14, %c0_15], %16 {strides = array<i32>} : memref<1x16xf32, #tpu.memory_space<vmem>>, vector<1x16xf32>,
    return
  }
  func.func @transform_0(%arg0: i32) -> (i32, i32) {
    %c0_i32 = arith.constant 0 : i32
    %c0_i32_0 = arith.constant 0 : i32
    return %arg0, %c0_i32 : i32, i32
  }
  func.func @transform_1(%arg0: i32) -> (i32, i32) {
    %c0_i32 = arith.constant 0 : i32
    %c0_i32_0 = arith.constant 0 : i32
    %c0_i32_1 = arith.constant 0 : i32
    return %c0_i32, %c0_i32_0 : i32, i32
  }
  func.func @transform_2(%arg0: i32) -> (i32, i32) {
    %c0_i32 = arith.constant 0 : i32
    %c0_i32_0 = arith.constant 0 : i32
    return %arg0, %c0_i32 : i32, i32
  }
  func.func @transform_3(%arg0: i32) -> (i32, i32) {
    %c0_i32 = arith.constant 0 : i32
    %c0_i32_0 = arith.constant 0 : i32
    %c0_i32_1 = arith.constant 0 : i32
    return %c0_i32, %c0_i32_0 : i32, i32
  }
  func.func @transform_4(%arg0: i32) -> (i32, i32) {
    %c0_i32 = arith.constant 0 : i32
    %c0_i32_0 = arith.constant 0 : i32
    %c0_i32_1 = arith.constant 0 : i32
    return %c0_i32, %c0_i32_0 : i32, i32
  }
}

</mosaic_0001>

<bundles_post_ra>
// kernel: tpu_custom_call.1
= control target key start
LH: loop header
LB: loop body
LE: loop exit
PB: predicated region body
PF: predicated region fallthrough
CT: control target
= control target key end

     0   :  { %10 = vsyncpa [#allocation3], 0  ;;  %v524_v1 = vmov 0.0   ;;  %vm525_vm0 = vmmov 0   ;;  %s774_s0 = inlined_call_operand.vmem [shape: bf16[112,128], index: 0, kind: input, shape index: {}]   ;;  %s775_s1 = inlined_call_operand.vmem [shape: bf16[128,16], index: 1, kind: input, shape index: {}]   ;;  %s776_s2 = inlined_call_operand.vmem [shape: f32[112,16], index: 2, kind: output, shape index: {0}]   ;;  %s777_s3 = inlined_call_operand.hbm [shape: f32[1,16], index: 3, kind: output, shape index: {1}]   ;;  %s778_s4 = inlined_call_operand.hbm [shape: f32[1,16], index: 4, kind: output, shape index: {2}]  }
   0x1   :  { %v461_v0 = vld [vmem:[%s775_s1] sm:$0xff]   ;;  %397 = vmatprep.subr.bf16.mxu0 %v524_v1  ;;  %441 = vmatprep.subr.bf16.mxu1 %v524_v1  ;;  %v462_v2 = vld [vmem:[%s775_s1 + $0x8] sm:$0xff]   ;;  %v463_v3 = vld [vmem:[%s775_s1 + $0x10] sm:$0xff]  }
   0x2   :  { %398 = vmatpush3.bf16.msra.mxu0 %v461_v0  ;;  %449 = vmatpush3.bf16.msra.mxu1 %v461_v0  ;;  %v464_v4 = vld [vmem:[%s775_s1 + $0x18] sm:$0xff]   ;;  %v465_v5 = vld [vmem:[%s775_s1 + $0x20] sm:$0xff]  }
   0x3   :  { %399 = vmatprep.subr.bf16.mxu0 %v524_v1  ;;  %442 = vmatprep.subr.bf16.mxu1 %v524_v1 }
   0x4   :  { %413 = vmatprep.mubr.msk.bf16.mxu0 %vm525_vm0, %v524_v1  ;;  %429 = vmatprep.mubr.msk.bf16.mxu1 %vm525_vm0, %v524_v1 }
   0x6   :  { %400 = vmatpush3.bf16.msra.mxu0 %v462_v2  ;;  %450 = vmatpush3.bf16.msra.mxu1 %v462_v2 }
   0x7   :  { %401 = vmatprep.subr.bf16.mxu0 %v524_v1  ;;  %443 = vmatprep.subr.bf16.mxu1 %v524_v1 }
   0xa   :  { %402 = vmatpush3.bf16.msra.mxu0 %v463_v3  ;;  %451 = vmatpush3.bf16.msra.mxu1 %v463_v3 }
   0xb   :  { %403 = vmatprep.subr.bf16.mxu0 %v524_v1  ;;  %444 = vmatprep.subr.bf16.mxu1 %v524_v1 }
   0xe   :  { %404 = vmatpush3.bf16.msra.mxu0 %v464_v4  ;;  %452 = vmatpush3.bf16.msra.mxu1 %v464_v4 }
   0xf   :  { %405 = vmatprep.subr.bf16.mxu0 %v524_v1  ;;  %445 = vmatprep.subr.bf16.mxu1 %v524_v1 }
  0x10   :  { %11 = vsyncpa [#allocation5], 0  ;;  %v466_v6 = vld [vmem:[%s775_s1 + $0x28] sm:$0xff]   ;;  %v467_v7 = vld [vmem:[%s775_s1 + $0x30] sm:$0xff]   ;;  %vm245_vm1 = vcmask 122880   ;;  %vm226_vm2 = vcmask 130048  }
  0x11   :  { %v468_v8 = vld [vmem:[%s775_s1 + $0x38] sm:$0xff]   ;;  %v469_v9 = vld [vmem:[%s774_s0] sm:$0xff]   ;;  %v470_v11 = vld [vmem:[%s774_s0 + $0x8] sm:$0xff]   ;;  %246 = vst.msk [vmem:[#allocation2] sm:$0x1] %vm245_vm1, %v524_v1  ;;  %s527_s19 = smov [#allocation4]  }
  0x12   :  { %406 = vmatpush3.bf16.msra.mxu0 %v465_v5  ;;  %453 = vmatpush3.bf16.msra.mxu1 %v465_v5  ;;  %v472_v10 = vld [vmem:[%s774_s0 + $0x20] sm:$0xff]   ;;  %v474_v12 = vld [vmem:[%s774_s0 + $0x28] sm:$0xff]   ;;  %v471_v13 = vld [vmem:[%s774_s0 + $0x10] sm:$0xff]   ;;  %247 = vst.msk [vmem:[#allocation4] sm:$0x1] %vm245_vm1, %v524_v1 }
  0x13   :  { %407 = vmatprep.subr.bf16.mxu0 %v524_v1  ;;  %446 = vmatprep.subr.bf16.mxu1 %v524_v1  ;;  %v475_v14 = vld [vmem:[%s774_s0 + $0x30] sm:$0xff]   ;;  %v473_v15 = vld [vmem:[%s774_s0 + $0x18] sm:$0xff]   ;;  %s353_s0 = sshll.u32 %s527_s19, 4  ;;  %s741_s0 = int_to_ptr.vmem [resolvable:$true] %s353_s0 }
  0x16   :  { %408 = vmatpush3.bf16.msra.mxu0 %v466_v6  ;;  %454 = vmatpush3.bf16.msra.mxu1 %v466_v6 }
  0x17   :  { %409 = vmatprep.subr.bf16.mxu0 %v524_v1  ;;  %447 = vmatprep.subr.bf16.mxu1 %v524_v1 }
  0x1a   :  { %410 = vmatpush3.bf16.msra.mxu0 %v467_v7  ;;  %455 = vmatpush3.bf16.msra.mxu1 %v467_v7 }
  0x1b   :  { %411 = vmatprep.subr.bf16.mxu0 %v524_v1  ;;  %448 = vmatprep.subr.bf16.mxu1 %v524_v1 }
  0x1e   :  { %412 = vmatpush3.bf16.msra.mxu0 %v468_v8  ;;  %456 = vmatpush3.bf16.msra.mxu1 %v468_v8 }
  0x21   :  { %414 = vmatmul.mubr.bf16.vlgmr.msra.gmra.mrb[0].mxu0 %v469_v9  ;;  %430 = vmatmul.mubr.bf16.vlgmr.msra.gmra.mrb[0].mxu1 %v472_v10 }
  0x22   :  { %417 = vmatprep.mubr.msk.bf16.mxu0 %vm525_vm0, %v524_v1  ;;  %433 = vmatprep.mubr.msk.bf16.mxu1 %vm525_vm0, %v524_v1 }
  0x29   :  { %418 = vmatmul.mubr.bf16.gmra.mrb[4].mxu0 %v470_v11  ;;  %434 = vmatmul.mubr.bf16.gmra.mrb[4].mxu1 %v474_v12 }
  0x2a   :  { %421 = vmatprep.mubr.msk.bf16.mxu0 %vm525_vm0, %v524_v1  ;;  %437 = vmatprep.mubr.msk.bf16.mxu1 %vm525_vm0, %v524_v1 }
  0x31   :  { %422 = vmatmul.mubr.bf16.gmra.mrb[8].mxu0 %v471_v13  ;;  %438 = vmatmul.mubr.bf16.gmra.mrb[8].mxu1 %v475_v14 }
  0x32   :  { %425 = vmatprep.mubr.msk.bf16.mxu0 %vm525_vm0, %v524_v1 }
  0x39   :  { %426 = vmatmul.mubr.bf16.gmra.mrb[12].mxu0 %v473_v15 }
  0xf4   :  { %v171_v16 = vpop.f32.mrb[0].mxu0  ;;  %v632_v17 = vpop.f32.mrb[0].mxu1 }
  0xf5   :  { %227 = vst.msk [vmem:[%s776_s2] sm:$0xff] %vm226_vm2, %v171_v16  ;;  %v286_v18 = vmul.f32 %v171_v16, %v171_v16  ;;  %v415_v19 = vpop.f32.mrb[1].mxu0  ;;  %235 = vst.msk [vmem:[%s776_s2 + $0x40] sm:$0xff] %vm226_vm2, %v632_v17  ;;  %v431_v20 = vpop.f32.mrb[1].mxu1  ;;  %v249_v23 = vsel %vm226_vm2, %v171_v16, 0.0  ;;  %v294_v10 = vmul.f32 %v632_v17, %v632_v17 }
  0xf6   :  { %v174_v21 = vpop.f32.mrb[2].mxu0  ;;  %v643_v22 = vpop.f32.mrb[2].mxu1 }
  0xf7   :  { %228 = vst.msk [vmem:[%s776_s2 + $0x8] sm:$0xff] %vm226_vm2, %v174_v21  ;;  %v250_v24 = vsel %vm226_vm2, %v174_v21, 0.0  ;;  %v287_v25 = vmul.f32 %v174_v21, %v174_v21  ;;  %v416_v26 = vpop.f32.mrb[3].mxu0  ;;  %236 = vst.msk [vmem:[%s776_s2 + $0x48] sm:$0xff] %vm226_vm2, %v643_v22  ;;  %v432_v27 = vpop.f32.mrb[3].mxu1  ;;  %v300_v29 = vsel %vm226_vm2, %v286_v18, 0.0  ;;  %v295_v19 = vmul.f32 %v643_v22, %v643_v22 }
  0xf8   :  { %v251_v28 = vadd.f32 %v250_v24, %v249_v23  ;;  %v264_v18 = vsel %vm226_vm2, %v632_v17, 0.0  ;;  %v315_v24 = vsel %vm226_vm2, %v294_v10, 0.0 }
  0xf9   :  { %v301_v30 = vsel %vm226_vm2, %v287_v25, 0.0  ;;  %v266_v25 = vsel %vm226_vm2, %v643_v22, 0.0 }
  0xfa   :  { %v302_v31 = vadd.f32 %v301_v30, %v300_v29  ;;  %v317_v29 = vsel %vm226_vm2, %v295_v19, 0.0 }
  0xfc   :  { %v179_v32 = vpop.f32.mrb[4].mxu0  ;;  %v658_v33 = vpop.f32.mrb[4].mxu1 }
  0xfd   :  { %229 = vst.msk [vmem:[%s776_s2 + $0x10] sm:$0xff] %vm226_vm2, %v179_v32  ;;  %v252_v34 = vsel %vm226_vm2, %v179_v32, 0.0  ;;  %v288_v35 = vmul.f32 %v179_v32, %v179_v32  ;;  %v419_v36 = vpop.f32.mrb[5].mxu0  ;;  %237 = vst.msk [vmem:[%s776_s2 + $0x50] sm:$0xff] %vm226_vm2, %v658_v33  ;;  %v435_v37 = vpop.f32.mrb[5].mxu1  ;;  %v296_v26 = vmul.f32 %v658_v33, %v658_v33  ;;  %v268_v17 = vsel %vm226_vm2, %v658_v33, 0.0 }
  0xfe   :  { %v253_v38 = vadd.f32 %v252_v34, %v251_v28  ;;  %v182_v39 = vpop.f32.mrb[6].mxu0  ;;  %v670_v40 = vpop.f32.mrb[6].mxu1 }
  0xff   :  { %v303_v41 = vsel %vm226_vm2, %v288_v35, 0.0  ;;  %230 = vst.msk [vmem:[%s776_s2 + $0x18] sm:$0xff] %vm226_vm2, %v182_v39  ;;  %v254_v42 = vsel %vm226_vm2, %v182_v39, 0.0  ;;  %v289_v43 = vmul.f32 %v182_v39, %v182_v39  ;;  %v420_v44 = vpop.f32.mrb[7].mxu0  ;;  %238 = vst.msk [vmem:[%s776_s2 + $0x58] sm:$0xff] %vm226_vm2, %v670_v40  ;;  %v436_v45 = vpop.f32.mrb[7].mxu1  ;;  %v297_v30 = vmul.f32 %v670_v40, %v670_v40 }
 0x100   :  { %v304_v46 = vadd.f32 %v303_v41, %v302_v31  ;;  %v255_v47 = vadd.f32 %v254_v42, %v253_v38  ;;  %v319_v35 = vsel %vm226_vm2, %v296_v26, 0.0  ;;  %v270_v22 = vsel %vm226_vm2, %v670_v40, 0.0 }
 0x101   :  { %v305_v48 = vsel %vm226_vm2, %v289_v43, 0.0  ;;  %v321_v39 = vsel %vm226_vm2, %v297_v30, 0.0 }
 0x102   :  { %v306_v49 = vadd.f32 %v305_v48, %v304_v46 }
 0x104   :  { %v187_v50 = vpop.f32.mrb[8].mxu0  ;;  %v219_v51 = vpop.f32.mrb[8].mxu1 }
 0x105   :  { %231 = vst.msk [vmem:[%s776_s2 + $0x20] sm:$0xff] %vm226_vm2, %v187_v50  ;;  %v256_v52 = vsel %vm226_vm2, %v187_v50, 0.0  ;;  %v290_v53 = vmul.f32 %v187_v50, %v187_v50  ;;  %v423_v54 = vpop.f32.mrb[9].mxu0  ;;  %239 = vst.msk [vmem:[%s776_s2 + $0x60] sm:$0xff] %vm226_vm2, %v219_v51  ;;  %v439_v55 = vpop.f32.mrb[9].mxu1  ;;  %v298_v31 = vmul.f32 %v219_v51, %v219_v51  ;;  %v272_v36 = vsel %vm226_vm2, %v219_v51, 0.0 }
 0x106   :  { %v257_v56 = vadd.f32 %v256_v52, %v255_v47  ;;  %v190_v57 = vpop.f32.mrb[10].mxu0  ;;  %v222_v58 = vpop.f32.mrb[10].mxu1 }
 0x107   :  { %v307_v59 = vsel %vm226_vm2, %v290_v53, 0.0  ;;  %232 = vst.msk [vmem:[%s776_s2 + $0x28] sm:$0xff] %vm226_vm2, %v190_v57  ;;  %v258_v60 = vsel %vm226_vm2, %v190_v57, 0.0  ;;  %v291_v61 = vmul.f32 %v190_v57, %v190_v57  ;;  %v424_v62 = vpop.f32.mrb[11].mxu0  ;;  %240 = vst.msk [vmem:[%s776_s2 + $0x68] sm:$0xff] %vm226_vm2, %v222_v58  ;;  %v440_v63 = vpop.f32.mrb[11].mxu1  ;;  %v299_v33 = vmul.f32 %v222_v58, %v222_v58 }
 0x108   :  { %v308_v0 = vadd.f32 %v307_v59, %v306_v49  ;;  %v259_v1 = vadd.f32 %v258_v60, %v257_v56  ;;  %v323_v41 = vsel %vm226_vm2, %v298_v31, 0.0  ;;  %v274_v44 = vsel %vm226_vm2, %v222_v58, 0.0  ;;  %v248_v57 = vld [vmem:[#allocation2] sm:$0x1]  ;;  %v285_v58 = vld [vmem:[#allocation4] sm:$0x1] }
 0x109   :  { %v309_v2 = vsel %vm226_vm2, %v291_v61, 0.0  ;;  %v325_v47 = vsel %vm226_vm2, %v299_v33, 0.0 }
 0x10a   :  { %v310_v3 = vadd.f32 %v309_v2, %v308_v0 }
 0x10c   :  { %v195_v4 = vpop.f32.mrb[12].mxu0 }
 0x10d   :  { %233 = vst.msk [vmem:[%s776_s2 + $0x30] sm:$0xff] %vm226_vm2, %v195_v4  ;;  %v260_v5 = vsel %vm226_vm2, %v195_v4, 0.0  ;;  %v292_v6 = vmul.f32 %v195_v4, %v195_v4  ;;  %v427_v7 = vpop.f32.mrb[13].mxu0 }
 0x10e   :  { %v261_v8 = vadd.f32 %v260_v5, %v259_v1  ;;  %v198_v9 = vpop.f32.mrb[14].mxu0 }
 0x10f   :  { %v311_v11 = vsel %vm226_vm2, %v292_v6, 0.0  ;;  %234 = vst.msk [vmem:[%s776_s2 + $0x38] sm:$0xff] %vm226_vm2, %v198_v9  ;;  %v262_v12 = vsel %vm226_vm2, %v198_v9, 0.0  ;;  %v293_v13 = vmul.f32 %v198_v9, %v198_v9  ;;  %v428_v14 = vpop.f32.mrb[15].mxu0  ;;  %s526_s2 = smov [#allocation2]  }
 0x110   :  { %v312_v15 = vadd.f32 %v311_v11, %v310_v3  ;;  %v263_v16 = vadd.f32 %v262_v12, %v261_v8  ;;  %s343_s18 = sshll.u32 %s526_s2, 4  ;;  %s344_s18 = int_to_ptr.vmem [resolvable:$true] %s343_s18 }
 0x111   :  { %v313_v20 = vsel %vm226_vm2, %v293_v13, 0.0  ;;  %s476_s20 = scalar_lea.vmem %s344_s18, 16  ;;  %s480_s21 = scalar_lea.vmem %s344_s18, 32 }
 0x112   :  { %v265_v21 = vadd.f32 %v264_v18, %v263_v16  ;;  %v314_v23 = vadd.f32 %v313_v20, %v312_v15  ;;  %p477_p0 = scmp.ne.s32.totalorder %s344_s18, %s476_s20  ;;  %p481_p1 = scmp.lt.s32.totalorder %s344_s18, %s344_s18 }
 0x113   :  { %p482_p2 = scmp.lt.s32.totalorder %s480_s21, %s476_s20 }
 0x114   :  { %v316_v27 = vadd.f32 %v315_v24, %v314_v23  ;;  %v267_v28 = vadd.f32 %v266_v25, %v265_v21 }
 0x115   :  { %p483_p3 = por %p482_p2, %p481_p1 }
 0x116   :  { %v269_v32 = vadd.f32 %v268_v17, %v267_v28  ;;  %v318_v34 = vadd.f32 %v317_v29, %v316_v27 }
 0x117   :  { %p484_p4 = pnand %p483_p3, %p477_p0 }
 0x118   :  { %v271_v37 = vadd.f32 %v270_v22, %v269_v32  ;;  %v320_v38 = vadd.f32 %v319_v35, %v318_v34 }
 0x11a   :  { %v322_v42 = vadd.f32 %v321_v39, %v320_v38  ;;  %v273_v43 = vadd.f32 %v272_v36, %v271_v37 }
 0x11c   :  { %v324_v45 = vadd.f32 %v323_v41, %v322_v42  ;;  %v275_v46 = vadd.f32 %v274_v44, %v273_v43 }
 0x11e   :  { %v276_v48 = vrot.slane %v275_v46, 4  ;;  %v326_v49 = vadd.f32 %v325_v47, %v324_v45 }
 0x120   :  { %v277_v40 = vadd.f32 %v276_v48, %v275_v46  ;;  %v327_v50 = vrot.slane %v326_v49, 4 }
 0x122   :  { %v278_v51 = vrot.slane %v277_v40, 2  ;;  %v328_v52 = vadd.f32 %v327_v50, %v326_v49 }
 0x124   :  { %v279_v53 = vadd.f32 %v278_v51, %v277_v40  ;;  %v329_v54 = vrot.slane %v328_v52, 2 }
 0x126   :  { %v330_v55 = vadd.f32 %v329_v54, %v328_v52  ;;  %v280_v56 = vrot.slane %v279_v53, 1 }
 0x128   :  { %v281_v59 = vadd.f32 %v280_v56, %v279_v53  ;;  %v331_v60 = vrot.slane %v330_v55, 1 }
 0x12a   :  { %v282_v61 = vadd.f32 %v281_v59, %v248_v57  ;;  %v332_v62 = vadd.f32 %v331_v60, %v330_v55 }
 0x12c   :  { %284 = vst.msk [vmem:[#allocation2] sm:$0x1] %vm245_vm1, %v282_v61  ;;  %v333_v63 = vadd.f32 %v332_v62, %v285_v58 }
 0x12d   :  { %487 = shalt.err (!%p484_p4)
}
 0x12e   :  { %s488_s24 = scalar_lea.hbm %s777_s3, 16 }
 0x12f   :  { %p489_p5 = scmp.ne.s32.totalorder %s777_s3, %s488_s24  ;;  %p492_p6 = scmp.lt.u32.totalorder %s488_s24, %s777_s3 }
 0x131   :  { %p494_p7 = pnand %p492_p6, %p489_p5 }
 0x133   :  { %497 = shalt.err (!%p494_p7)
}
 0x134   :  { %346 = dma.vmem_to_hbm [thread:$0]  %s344_s18, 16, %s777_s3, [#allocation3]   ;;  %334 = vst.msk [vmem:[#allocation4] sm:$0x1] %vm245_vm1, %v333_v63 }
 0x135   :  { %s498_s5 = scalar_lea.vmem %s741_s0, 16  ;;  %s502_s6 = scalar_lea.vmem %s741_s0, 32 }
 0x136   :  { %p499_p8 = scmp.ne.s32.totalorder %s741_s0, %s498_s5  ;;  %p503_p9 = scmp.lt.s32.totalorder %s741_s0, %s741_s0 }
 0x137   :  { %p504_p10 = scmp.lt.s32.totalorder %s502_s6, %s498_s5 }
 0x139   :  { %p505_p11 = por %p504_p10, %p503_p9 }
 0x13b   :  { %p506_p12 = pnand %p505_p11, %p499_p8 }
 0x13d   :  { %509 = shalt.err (!%p506_p12)
}
 0x13e   :  { %s510_s1 = scalar_lea.hbm %s778_s4, 16 }
 0x13f   :  { %p511_p13 = scmp.ne.s32.totalorder %s778_s4, %s510_s1  ;;  %p514_p0 = scmp.lt.u32.totalorder %s510_s1, %s778_s4 }
 0x141   :  { %p516_p1 = pnand %p514_p0, %p511_p13 }
 0x143   :  { %519 = shalt.err (!%p516_p1)
}
 0x144   :  { %356 = dma.vmem_to_hbm [thread:$0]  %s741_s0, 16, %s778_s4, [#allocation5]  }
 0x145   :  { %520 = dma.done.wait [#allocation3], 16  }
 0x146   :  { %521 = vsyncadd [#allocation3], 4294967280 }
 0x147   :  { %522 = dma.done.wait [#allocation5], 16  }
 0x148   :  { %523 = vsyncadd [#allocation5], 4294967280 }
 0x149   :  { %365 = vsyncpa [#allocation3], 1 }
 0x14a   :  { %366 = vsyncpa [#allocation5], 1 }

</bundles_post_ra>
